<compile_context>
chip_gen: v6e
topology: v6e:2x2x1
jax: 0.10.0
libtpu: 0.0.40
codegen_flags: <defaults>
</compile_context>

<pallas_src>
import jax
import jax.numpy as jnp
import numpy as np
from jax import lax
from jax.experimental import pallas as pl
from jax.experimental.pallas import tpu as pltpu


# --------------------------------------------------------------------------- #
# Kernel
# --------------------------------------------------------------------------- #
def _make_kernel(N: int, C: int, num_heads: int, head_dim: int,
                 tq: int, tkv: int):
    H, hd = num_heads, head_dim
    A = H * hd
    num_kv = N // tkv

    def kernel(x_ref, wq_ref, bq_ref, wkv_ref, bkv_ref, wp_ref, bp_ref,
               o_ref, k_scr, v_scr):
        qi = pl.program_id(1)

        # ---- once per batch element: K/V projection into VMEM scratch ------
        @pl.when(qi == 0)
        def _():
            xb = x_ref[0].astype(jnp.bfloat16)                        # (N, C)
            kv = jnp.dot(xb, wkv_ref[...],
                         preferred_element_type=jnp.float32) + bkv_ref[...]
            kv = kv.astype(jnp.bfloat16)                              # early cast
            k_scr[...] = jnp.transpose(kv[:, :A].reshape(N, H, hd), (1, 0, 2))
            v_scr[...] = jnp.transpose(kv[:, A:].reshape(N, H, hd), (1, 0, 2))

        # ---- Q projection for this query tile (scale folded in wq/bq) ------
        q_start = pl.multiple_of(qi * tq, tq)
        xq = x_ref[0, pl.ds(q_start, tq), :].astype(jnp.bfloat16)     # (tq, C)
        q = jnp.dot(xq, wq_ref[...],
                    preferred_element_type=jnp.float32) + bq_ref[...]
        q = jnp.transpose(q.astype(jnp.bfloat16).reshape(tq, H, hd),
                          (1, 0, 2))                                   # (H, tq, hd)

        # ---- online-softmax (flash) loop over KV tiles ----------------------
        def body(j, carry):
            m, l, acc = carry
            ks = pl.multiple_of(j * tkv, tkv)
            k_t = k_scr[:, pl.ds(ks, tkv), :]                         # (H, tkv, hd)
            v_t = v_scr[:, pl.ds(ks, tkv), :]
            s = jnp.einsum('hqd,hkd->hqk', q, k_t,
                           preferred_element_type=jnp.float32)        # (H, tq, tkv)
            m_new = jnp.maximum(m, jnp.max(s, axis=-1, keepdims=True))
            alpha = jnp.exp(m - m_new)                                # f32 (v5e-safe)
            p = jnp.exp(s - m_new)
            l = alpha * l + jnp.sum(p, axis=-1, keepdims=True)
            acc = alpha * acc + jnp.einsum('hqk,hkd->hqd',
                                           p.astype(jnp.bfloat16), v_t,
                                           preferred_element_type=jnp.float32)
            return m_new, l, acc

        m0 = jnp.full((H, tq, 1), -jnp.inf, jnp.float32)
        l0 = jnp.zeros((H, tq, 1), jnp.float32)
        a0 = jnp.zeros((H, tq, hd), jnp.float32)
        m, l, acc = lax.fori_loop(0, num_kv, body, (m0, l0, a0))

        # ---- post-PV normalization (over (H,tq,hd), not (H,tq,N)) -----------
        o = acc * pl.reciprocal(l, approx=True)                       # (H, tq, hd)

        # ---- output projection without transposing o ------------------------
        out = jnp.einsum('hqd,hdc->hqc', o.astype(jnp.bfloat16), wp_ref[...],
                         preferred_element_type=jnp.float32).sum(axis=0)
        o_ref[0] = out + bp_ref[...]                                  # (tq, C)

    return kernel


# --------------------------------------------------------------------------- #
# One-time parameter preparation (hoisted out of the per-call path)
# --------------------------------------------------------------------------- #
def prepare_eva_attention_params(w_qkv, q_bias, v_bias, w_proj, b_proj,
                                 num_heads):
    """PyTorch nn.Linear conventions: w_qkv (3A, C), q/v_bias (A,),
       w_proj (C, A), b_proj (C,)."""
    A = w_qkv.shape[0] // 3
    C = w_qkv.shape[1]
    hd = A // num_heads
    scale = float(hd) ** -0.5

    wt = jnp.asarray(w_qkv, jnp.float32).T                            # (C, 3A)
    w_q = (wt[:, :A] * scale).astype(jnp.bfloat16)                    # scale folded
    w_kv = wt[:, A:].astype(jnp.bfloat16)                             # (C, 2A)
    b_q = (jnp.asarray(q_bias, jnp.float32) * scale).reshape(1, A)
    b_kv = jnp.concatenate([jnp.zeros((A,), jnp.float32),             # k_bias = 0
                            jnp.asarray(v_bias, jnp.float32)]).reshape(1, 2 * A)
    w_p = jnp.asarray(w_proj, jnp.float32).T.reshape(num_heads, hd, C)
    w_p = w_p.astype(jnp.bfloat16)                                    # (H, hd, C)
    b_p = jnp.asarray(b_proj, jnp.float32).reshape(1, C)
    return dict(w_q=w_q, b_q=b_q, w_kv=w_kv, b_kv=b_kv, w_p=w_p, b_p=b_p)


# --------------------------------------------------------------------------- #
# Forward wrapper
# --------------------------------------------------------------------------- #
def _pick_tile(n, preferred):
    for t in preferred:
        if n % t == 0:
            return t
    return n


def _ceil_to(v, m):
    return -(-v // m) * m


def _estimate_vmem_bytes(N, C, A, H, hd, tq, tkv):
    lane, sub = 128, 8
    c_p, a_p, hd_p = _ceil_to(C, lane), _ceil_to(A, lane), _ceil_to(hd, lane)
    n_p, tq_p, tkv_p = _ceil_to(N, sub), _ceil_to(tq, sub), _ceil_to(tkv, sub)
    est = 0
    est += 2 * n_p * c_p * 4                                   # x block (f32, 2-buf)
    est += 2 * tq_p * c_p * 4                                  # out block (f32, 2-buf)
    est += (c_p * a_p + c_p * 2 * a_p + H * hd_p * c_p) * 2    # bf16 weights (1-buf)
    est += 3 * a_p * 4 + c_p * 4                               # biases (1-buf)
    est += 2 * H * n_p * hd_p * 2                              # K/V scratch bf16
    est += n_p * 2 * a_p * 4                                   # transient (N,2A) f32 proj
    est += 2 * H * tq_p * tkv_p * 4                            # score tile + exp
    est += H * tq_p * (hd_p + c_p) * 4                         # acc + per-head proj
    return est


def eva_attention_forward(x, params, num_heads):
    """x: (B, N, C) float32; params from prepare_eva_attention_params."""
    B, N, C = x.shape
    A = params['w_q'].shape[1]
    H = num_heads
    hd = A // H
    assert A == H * hd

    tq = _pick_tile(N, (128, 64, 32, 16, 8))
    tkv = _pick_tile(N, (512, 256, 128, 64, 32, 16, 8))

    kernel = _make_kernel(N, C, H, hd, tq, tkv)

    # Constant weight/bias blocks: full array, constant index map, single buffer.
    def _const_spec(shape):
        zeros = (0,) * len(shape)
        return pl.BlockSpec(shape, lambda b, q: zeros,
                            pipeline_mode=pl.Buffered(1))

    # Explicit scoped-VMEM budget (v7x has only 64 MiB physical -> keep headroom).
    est = _estimate_vmem_bytes(N, C, A, H, hd, tq, tkv)
    vmem_limit = int(min(96 * 2 ** 20, max(2 * est, 32 * 2 ** 20)))

    return pl.pallas_call(
        kernel,
        out_shape=jax.ShapeDtypeStruct((B, N, C), jnp.float32),
        grid_spec=pltpu.PrefetchScalarGridSpec(
            num_scalar_prefetch=0,
            grid=(B, N // tq),
            in_specs=[
                pl.BlockSpec((1, N, C), lambda b, q: (b, 0, 0)),  # x (f32, cast in-kernel)
                _const_spec((C, A)),          # w_q  (bf16, scale folded)
                _const_spec((1, A)),          # b_q  (f32, scale folded)
                _const_spec((C, 2 * A)),      # w_kv (bf16)
                _const_spec((1, 2 * A)),      # b_kv (f32)
                _const_spec((H, hd, C)),      # w_p  (bf16, per-head)
                _const_spec((1, C)),          # b_p  (f32)
            ],
            out_specs=pl.BlockSpec((1, tq, C), lambda b, q: (b, q, 0)),
            scratch_shapes=[
                pltpu.VMEM((H, N, hd), jnp.bfloat16),   # K (persists across q tiles)
                pltpu.VMEM((H, N, hd), jnp.bfloat16),   # V
            ],
        ),
        compiler_params=pltpu.CompilerParams(
            # batch axis parallel (megacore); query axis must stay sequential so
            # the K/V scratch computed at qi == 0 can be reused by later tiles.
            dimension_semantics=("parallel", "arbitrary"),
            vmem_limit_bytes=vmem_limit,
        ),
    )(x, params['w_q'], params['b_q'], params['w_kv'], params['b_kv'],
      params['w_p'], params['b_p'])


# --------------------------------------------------------------------------- #
# Pure-JAX reference (transcription of the PyTorch forward, rope/mask = None)
# --------------------------------------------------------------------------- #
def eva_attention_reference(x, w_qkv, q_bias, v_bias, w_proj, b_proj, num_heads):
    B, N, C = x.shape
    A = w_qkv.shape[0] // 3
    hd = A // num_heads
    bias = jnp.concatenate([q_bias, jnp.zeros_like(q_bias), v_bias])
    qkv = x @ w_qkv.T + bias
    qkv = qkv.reshape(B, N, 3, num_heads, hd).transpose(2, 0, 3, 1, 4)
    q, k, v = qkv[0], qkv[1], qkv[2]
    scale = float(hd) ** -0.5
    attn = jax.nn.softmax((q * scale) @ jnp.swapaxes(k, -2, -1), axis=-1)
    o = attn @ v                                          # (B, H, N, hd)
    o = jnp.swapaxes(o, 1, 2).reshape(B, N, A)            # norm = Identity
    return o @ w_proj.T + b_proj


# --------------------------------------------------------------------------- #
if __name__ == "__main__":
    # Small shapes consistent with the module: dim=32, num_heads=4 -> head_dim=8.
    # (Production shapes should use hd / C that are multiples of 128 for
    #  lane-dense layouts; this toy size only validates correctness.)
    B, N, C = 2, 8, 32
    num_heads = 4
    A = C  # all_head_dim

    key = jax.random.PRNGKey(0)
    kx, kw1, kb1, kb2, kw2, kb3 = jax.random.split(key, 6)

    x = jax.random.normal(kx, (B, N, C), dtype=jnp.float32)
    w_qkv = jax.random.normal(kw1, (3 * A, C), dtype=jnp.float32) * 0.05
    q_bias = jax.random.normal(kb1, (A,), dtype=jnp.float32) * 0.05
    v_bias = jax.random.normal(kb2, (A,), dtype=jnp.float32) * 0.05
    w_proj = jax.random.normal(kw2, (C, A), dtype=jnp.float32) * 0.05
    b_proj = jax.random.normal(kb3, (C,), dtype=jnp.float32) * 0.05

    # Weight preparation happens once, outside the per-call path.
    params = prepare_eva_attention_params(w_qkv, q_bias, v_bias, w_proj,
                                          b_proj, num_heads)

    out = eva_attention_forward(x, params, num_heads)
    out = jax.block_until_ready(out)

    ref = eva_attention_reference(x, w_qkv, q_bias, v_bias, w_proj, b_proj,
                                  num_heads)
    # bf16 matmul operands (f32 accumulation) + approx reciprocal -> looser tol.
    np.testing.assert_allclose(np.asarray(out), np.asarray(ref),
                               rtol=2e-2, atol=2e-2)
    print("KERNEL_OK")
</pallas_src>

<mosaic_0001>
module attributes {stable_mosaic.version = 11 : i64} {
  func.func @kernel(%arg0: i32, %arg1: i32, %arg2: memref<1x8x32xf32, #tpu.memory_space<vmem>>, %arg3: memref<32x32xbf16, #tpu.memory_space<vmem>>, %arg4: memref<1x32xf32, #tpu.memory_space<vmem>>, %arg5: memref<32x64xbf16, #tpu.memory_space<vmem>>, %arg6: memref<1x64xf32, #tpu.memory_space<vmem>>, %arg7: memref<4x8x32xbf16, #tpu.memory_space<vmem>>, %arg8: memref<1x32xf32, #tpu.memory_space<vmem>>, %arg9: memref<1x8x32xf32, #tpu.memory_space<vmem>>, %arg10: memref<4x8x8xbf16, #tpu.memory_space<vmem>>, %arg11: memref<4x8x8xbf16, #tpu.memory_space<vmem>>) attributes {dimension_semantics = [#tpu.dimension_semantics<parallel>, #tpu.dimension_semantics<arbitrary>], iteration_bounds = array<i64: 2, 1>, scalar_prefetch = 0 : i64, scratch_operands = 2 : i64, tpu.core_type = #tpu.core_type<tc>, window_params = [{transform_indices = @transform_0, window_bounds = array<i64: 1, 8, 32>}, {pipeline_mode = #tpu.pipeline_mode<synchronous>, transform_indices = @transform_1, window_bounds = array<i64: 32, 32>}, {pipeline_mode = #tpu.pipeline_mode<synchronous>, transform_indices = @transform_2, window_bounds = array<i64: 1, 32>}, {pipeline_mode = #tpu.pipeline_mode<synchronous>, transform_indices = @transform_3, window_bounds = array<i64: 32, 64>}, {pipeline_mode = #tpu.pipeline_mode<synchronous>, transform_indices = @transform_4, window_bounds = array<i64: 1, 64>}, {pipeline_mode = #tpu.pipeline_mode<synchronous>, transform_indices = @transform_5, window_bounds = array<i64: 4, 8, 32>}, {pipeline_mode = #tpu.pipeline_mode<synchronous>, transform_indices = @transform_6, window_bounds = array<i64: 1, 32>}, {transform_indices = @transform_7, window_bounds = array<i64: 1, 8, 32>}]} {
    %c0_i32 = arith.constant 0 : i32
    %0 = arith.cmpi eq, %arg1, %c0_i32 : i32
    %1 = arith.extui %0 : i1 to i32
    %c0_i32_0 = arith.constant 0 : i32
    %2 = arith.cmpi ne, %1, %c0_i32_0 : i32
    scf.if %2 {
      %c0_29 = arith.constant 0 : index
      %c0_30 = arith.constant 0 : index
      %c0_31 = arith.constant 0 : index
      %57 = vector.load %arg2[%c0_29, %c0_30, %c0_31] : memref<1x8x32xf32, #tpu.memory_space<vmem>>, vector<1x8x32xf32>
      %58 = vector.shape_cast %57 : vector<1x8x32xf32> to vector<8x32xf32>
      %59 = arith.truncf %58 : vector<8x32xf32> to vector<8x32xbf16>
      %c0_32 = arith.constant 0 : index
      %c0_33 = arith.constant 0 : index
      %60 = vector.load %arg5[%c0_32, %c0_33] : memref<32x64xbf16, #tpu.memory_space<vmem>>, vector<32x64xbf16>
      %cst_34 = arith.constant dense<0.000000e+00> : vector<8x64xf32>
      %61 = tpu.matmul %59, %60, %cst_34 {dimension_numbers = #tpu.dot_dimension_numbers<[1], [0], [0], [1], [0, 0, 1, 1], [], []>} : vector<8x32xbf16>, vector<32x64xbf16>, vector<8x64xf32> -> vector<8x64xf32>
      %c0_35 = arith.constant 0 : index
      %c0_36 = arith.constant 0 : index
      %62 = vector.load %arg6[%c0_35, %c0_36] : memref<1x64xf32, #tpu.memory_space<vmem>>, vector<1x64xf32>
      %63 = vector.broadcast %62 : vector<1x64xf32> to vector<8x64xf32>
      %64 = arith.addf %61, %63 : vector<8x64xf32>
      %65 = arith.truncf %64 : vector<8x64xf32> to vector<8x64xbf16>
      %66 = vector.extract_strided_slice %65 {offsets = [0, 0], sizes = [8, 32], strides = [1, 1]} : vector<8x64xbf16> to vector<8x32xbf16>
      %67 = vector.shape_cast %66 : vector<8x32xbf16> to vector<8x4x8xbf16>
      %68 = tpu.transpose %67, [1, 0, 2] : vector<8x4x8xbf16> -> vector<4x8x8xbf16>
      %c0_37 = arith.constant 0 : index
      %c0_38 = arith.constant 0 : index
      %c0_39 = arith.constant 0 : index
      %69 = vector.load %arg10[%c0_37, %c0_38, %c0_39] : memref<4x8x8xbf16, #tpu.memory_space<vmem>>, vector<4x8x8xbf16>
      tpu.vector_store %arg10[%c0_37, %c0_38, %c0_39], %68 {strides = array<i32>} : memref<4x8x8xbf16, #tpu.memory_space<vmem>>, vector<4x8x8xbf16>,
      %70 = vector.extract_strided_slice %65 {offsets = [0, 32], sizes = [8, 32], strides = [1, 1]} : vector<8x64xbf16> to vector<8x32xbf16>
      %71 = vector.shape_cast %70 : vector<8x32xbf16> to vector<8x4x8xbf16>
      %72 = tpu.transpose %71, [1, 0, 2] : vector<8x4x8xbf16> -> vector<4x8x8xbf16>
      %c0_40 = arith.constant 0 : index
      %c0_41 = arith.constant 0 : index
      %c0_42 = arith.constant 0 : index
      %73 = vector.load %arg11[%c0_40, %c0_41, %c0_42] : memref<4x8x8xbf16, #tpu.memory_space<vmem>>, vector<4x8x8xbf16>
      tpu.vector_store %arg11[%c0_40, %c0_41, %c0_42], %72 {strides = array<i32>} : memref<4x8x8xbf16, #tpu.memory_space<vmem>>, vector<4x8x8xbf16>,
    } else {
    }
    %c8_i32 = arith.constant 8 : i32
    %3 = arith.muli %arg1, %c8_i32 : i32
    %4 = tpu.assume_multiple %3, 8 : i32
    %c0 = arith.constant 0 : index
    %5 = arith.index_cast %4 : i32 to index
    %c0_1 = arith.constant 0 : index
    %6 = vector.load %arg2[%c0, %5, %c0_1] : memref<1x8x32xf32, #tpu.memory_space<vmem>>, vector<1x8x32xf32>
    %7 = vector.shape_cast %6 : vector<1x8x32xf32> to vector<8x32xf32>
    %8 = arith.truncf %7 : vector<8x32xf32> to vector<8x32xbf16>
    %c0_2 = arith.constant 0 : index
    %c0_3 = arith.constant 0 : index
    %9 = vector.load %arg3[%c0_2, %c0_3] : memref<32x32xbf16, #tpu.memory_space<vmem>>, vector<32x32xbf16>
    %cst = arith.constant dense<0.000000e+00> : vector<8x32xf32>
    %10 = tpu.matmul %8, %9, %cst {dimension_numbers = #tpu.dot_dimension_numbers<[1], [0], [0], [1], [0, 0, 1, 1], [], []>} : vector<8x32xbf16>, vector<32x32xbf16>, vector<8x32xf32> -> vector<8x32xf32>
    %c0_4 = arith.constant 0 : index
    %c0_5 = arith.constant 0 : index
    %11 = vector.load %arg4[%c0_4, %c0_5] : memref<1x32xf32, #tpu.memory_space<vmem>>, vector<1x32xf32>
    %12 = vector.broadcast %11 : vector<1x32xf32> to vector<8x32xf32>
    %13 = arith.addf %10, %12 : vector<8x32xf32>
    %14 = arith.truncf %13 : vector<8x32xf32> to vector<8x32xbf16>
    %15 = vector.shape_cast %14 : vector<8x32xbf16> to vector<8x4x8xbf16>
    %16 = tpu.transpose %15, [1, 0, 2] : vector<8x4x8xbf16> -> vector<4x8x8xbf16>
    %cst_6 = arith.constant 0xFF800000 : f32
    %17 = vector.broadcast %cst_6 : f32 to vector<4x8x1xf32>
    %cst_7 = arith.constant 0.000000e+00 : f32
    %18 = vector.broadcast %cst_7 : f32 to vector<4x8x1xf32>
    %cst_8 = arith.constant 0.000000e+00 : f32
    %19 = vector.broadcast %cst_8 : f32 to vector<4x8x8xf32>
    %c0_i32_9 = arith.constant 0 : i32
    %c8_i32_10 = arith.constant 8 : i32
    %20 = arith.muli %c0_i32_9, %c8_i32_10 : i32
    %21 = tpu.assume_multiple %20, 8 : i32
    %c0_11 = arith.constant 0 : index
    %22 = arith.index_cast %21 : i32 to index
    %c0_12 = arith.constant 0 : index
    %23 = vector.load %arg10[%c0_11, %22, %c0_12] : memref<4x8x8xbf16, #tpu.memory_space<vmem>>, vector<4x8x8xbf16>
    %c0_13 = arith.constant 0 : index
    %24 = arith.index_cast %21 : i32 to index
    %c0_14 = arith.constant 0 : index
    %25 = vector.load %arg11[%c0_13, %24, %c0_14] : memref<4x8x8xbf16, #tpu.memory_space<vmem>>, vector<4x8x8xbf16>
    "tpu.trace_start"() <{level = 10 : i32, message = "hqd,hkd->hqk"}> : () -> ()
    %cst_15 = arith.constant dense<0.000000e+00> : vector<4x8x8xf32>
    %26 = tpu.matmul %16, %23, %cst_15 {dimension_numbers = #tpu.dot_dimension_numbers<[2], [2], [1], [1], [0, 0, 0, 1, 1, 1], [0], [0]>} : vector<4x8x8xbf16>, vector<4x8x8xbf16>, vector<4x8x8xf32> -> vector<4x8x8xf32>
    "tpu.trace_stop"() : () -> ()
    %cst_16 = arith.constant dense<0xFF800000> : vector<4x8xf32>
    %27 = vector.multi_reduction <maximumf>, %26, %cst_16 [2] : vector<4x8x8xf32> to vector<4x8xf32>
    %28 = vector.shape_cast %27 : vector<4x8xf32> to vector<4x8x1xf32>
    %29 = arith.maximumf %17, %28 : vector<4x8x1xf32>
    %30 = arith.subf %17, %29 : vector<4x8x1xf32>
    %31 = math.exp %30 : vector<4x8x1xf32>
    %32 = vector.broadcast %29 : vector<4x8x1xf32> to vector<4x8x8xf32>
    %33 = arith.subf %26, %32 : vector<4x8x8xf32>
    %34 = math.exp %33 : vector<4x8x8xf32>
    %35 = arith.mulf %31, %18 : vector<4x8x1xf32>
    %cst_17 = arith.constant dense<0.000000e+00> : vector<4x8xf32>
    %36 = vector.multi_reduction <add>, %34, %cst_17 [2] : vector<4x8x8xf32> to vector<4x8xf32>
    %37 = vector.shape_cast %36 : vector<4x8xf32> to vector<4x8x1xf32>
    %38 = arith.addf %35, %37 : vector<4x8x1xf32>
    %39 = vector.broadcast %31 : vector<4x8x1xf32> to vector<4x8x8xf32>
    %40 = arith.mulf %39, %19 : vector<4x8x8xf32>
    %41 = arith.truncf %34 : vector<4x8x8xf32> to vector<4x8x8xbf16>
    "tpu.trace_start"() <{level = 10 : i32, message = "hqk,hkd->hqd"}> : () -> ()
    %cst_18 = arith.constant dense<0.000000e+00> : vector<4x8x8xf32>
    %42 = tpu.matmul %41, %25, %cst_18 {dimension_numbers = #tpu.dot_dimension_numbers<[2], [1], [1], [2], [0, 0, 0, 1, 1, 2], [0], [0]>} : vector<4x8x8xbf16>, vector<4x8x8xbf16>, vector<4x8x8xf32> -> vector<4x8x8xf32>
    "tpu.trace_stop"() : () -> ()
    %43 = arith.addf %40, %42 : vector<4x8x8xf32>
    %c1_i32 = arith.constant 1 : i32
    %44 = tpu.reciprocal %38 {approx = true} : vector<4x8x1xf32> -> vector<4x8x1xf32>
    %45 = vector.broadcast %44 : vector<4x8x1xf32> to vector<4x8x8xf32>
    %46 = arith.mulf %43, %45 : vector<4x8x8xf32>
    %47 = arith.truncf %46 : vector<4x8x8xf32> to vector<4x8x8xbf16>
    %c0_19 = arith.constant 0 : index
    %c0_20 = arith.constant 0 : index
    %c0_21 = arith.constant 0 : index
    %48 = vector.load %arg7[%c0_19, %c0_20, %c0_21] : memref<4x8x32xbf16, #tpu.memory_space<vmem>>, vector<4x8x32xbf16>
    "tpu.trace_start"() <{level = 10 : i32, message = "hqd,hdc->hqc"}> : () -> ()
    %cst_22 = arith.constant dense<0.000000e+00> : vector<4x8x32xf32>
    %49 = tpu.matmul %47, %48, %cst_22 {dimension_numbers = #tpu.dot_dimension_numbers<[2], [1], [1], [2], [0, 0, 0, 1, 1, 2], [0], [0]>} : vector<4x8x8xbf16>, vector<4x8x32xbf16>, vector<4x8x32xf32> -> vector<4x8x32xf32>
    "tpu.trace_stop"() : () -> ()
    %cst_23 = arith.constant dense<0.000000e+00> : vector<8x32xf32>
    %50 = vector.multi_reduction <add>, %49, %cst_23 [0] : vector<4x8x32xf32> to vector<8x32xf32>
    %c0_24 = arith.constant 0 : index
    %c0_25 = arith.constant 0 : index
    %51 = vector.load %arg8[%c0_24, %c0_25] : memref<1x32xf32, #tpu.memory_space<vmem>>, vector<1x32xf32>
    %52 = vector.broadcast %51 : vector<1x32xf32> to vector<8x32xf32>
    %53 = arith.addf %50, %52 : vector<8x32xf32>
    %c0_26 = arith.constant 0 : index
    %c0_27 = arith.constant 0 : index
    %c0_28 = arith.constant 0 : index
    %54 = vector.load %arg9[%c0_26, %c0_27, %c0_28] : memref<1x8x32xf32, #tpu.memory_space<vmem>>, vector<1x8x32xf32>
    %55 = vector.shape_cast %54 : vector<1x8x32xf32> to vector<8x32xf32>
    %56 = vector.shape_cast %53 : vector<8x32xf32> to vector<1x8x32xf32>
    tpu.vector_store %arg9[%c0_26, %c0_27, %c0_28], %56 {strides = array<i32>} : memref<1x8x32xf32, #tpu.memory_space<vmem>>, vector<1x8x32xf32>,
    return
  }
  func.func @transform_0(%arg0: i32, %arg1: i32) -> (i32, i32, i32) {
    %c0_i32 = arith.constant 0 : i32
    %c0_i32_0 = arith.constant 0 : i32
    %c0_i32_1 = arith.constant 0 : i32
    return %arg0, %c0_i32, %c0_i32_0 : i32, i32, i32
  }
  func.func @transform_1(%arg0: i32, %arg1: i32) -> (i32, i32) {
    %c0_i32 = arith.constant 0 : i32
    %c0_i32_0 = arith.constant 0 : i32
    %c0_i32_1 = arith.constant 0 : i32
    return %c0_i32, %c0_i32_0 : i32, i32
  }
  func.func @transform_2(%arg0: i32, %arg1: i32) -> (i32, i32) {
    %c0_i32 = arith.constant 0 : i32
    %c0_i32_0 = arith.constant 0 : i32
    %c0_i32_1 = arith.constant 0 : i32
    return %c0_i32, %c0_i32_0 : i32, i32
  }
  func.func @transform_3(%arg0: i32, %arg1: i32) -> (i32, i32) {
    %c0_i32 = arith.constant 0 : i32
    %c0_i32_0 = arith.constant 0 : i32
    %c0_i32_1 = arith.constant 0 : i32
    return %c0_i32, %c0_i32_0 : i32, i32
  }
  func.func @transform_4(%arg0: i32, %arg1: i32) -> (i32, i32) {
    %c0_i32 = arith.constant 0 : i32
    %c0_i32_0 = arith.constant 0 : i32
    %c0_i32_1 = arith.constant 0 : i32
    return %c0_i32, %c0_i32_0 : i32, i32
  }
  func.func @transform_5(%arg0: i32, %arg1: i32) -> (i32, i32, i32) {
    %c0_i32 = arith.constant 0 : i32
    %c0_i32_0 = arith.constant 0 : i32
    %c0_i32_1 = arith.constant 0 : i32
    %c0_i32_2 = arith.constant 0 : i32
    return %c0_i32, %c0_i32_0, %c0_i32_1 : i32, i32, i32
  }
  func.func @transform_6(%arg0: i32, %arg1: i32) -> (i32, i32) {
    %c0_i32 = arith.constant 0 : i32
    %c0_i32_0 = arith.constant 0 : i32
    %c0_i32_1 = arith.constant 0 : i32
    return %c0_i32, %c0_i32_0 : i32, i32
  }
  func.func @transform_7(%arg0: i32, %arg1: i32) -> (i32, i32, i32) {
    %c0_i32 = arith.constant 0 : i32
    %c0_i32_0 = arith.constant 0 : i32
    return %arg0, %arg1, %c0_i32 : i32, i32, i32
  }
}

</mosaic_0001>

<bundles_post_ra>
// kernel: tpu_custom_call.1
= control target key start
LH: loop header
LB: loop body
LE: loop exit
PB: predicated region body
PF: predicated region fallthrough
CT: control target
= control target key end

     0   :  { %s2707_s0 = inlined_call_operand.hbm [shape: f32[2,8,32], index: 0, kind: input, shape index: {}]   ;;  %s2708_s1 = inlined_call_operand.hbm [shape: bf16[32,32], index: 1, kind: input, shape index: {}]   ;;  %s2709_s2 = inlined_call_operand.vmem [shape: f32[1,32], index: 2, kind: input, shape index: {}]   ;;  %s2710_s3 = inlined_call_operand.hbm [shape: bf16[32,64], index: 3, kind: input, shape index: {}]   ;;  %s2711_s4 = inlined_call_operand.vmem [shape: f32[1,64], index: 4, kind: input, shape index: {}]   ;;  %s2712_s5 = inlined_call_operand.hbm [shape: bf16[4,8,32], index: 5, kind: input, shape index: {}]   ;;  %s2713_s6 = inlined_call_operand.vmem [shape: f32[1,32], index: 6, kind: input, shape index: {}]   ;;  %s2714_s7 = inlined_call_operand.hbm [shape: f32[2,8,32], index: 7, kind: output, shape index: {}]  }
   0x1   :  { %2719 = sst [smem:[#allocation17_spill]] %s2708_s1 }
   0x2   :  { %2720 = sst [smem:[#allocation18_spill]] %s2710_s3 }
   0x3   :  { %2721 = sst [smem:[#allocation19_spill]] %s2712_s5 }
   0x4   :  { %12 = vsyncpa [#allocation5], 0 }
   0x5   :  { %14 = vsyncpa [#allocation5 + $0x1], 0 }
   0x6   :  { %15 = vsyncpa [#allocation8], 0 }
   0x7   :  { %16 = vsyncpa [#allocation11], 0 }
   0x8   :  { %17 = vsyncpa [#allocation6], 0 }
   0x9   :  { %19 = vsyncpa [#allocation6 + $0x1], 0  ;;  %s2347_s24 = smov 0   ;;  %s2349_s25 = smov 0  }
   0xa   :  { %s2351_s26 = smov 0   ;;  %s2353_s27 = smov 0  }
   0xb   :  { %s2355_s28 = smov 0   ;;  %s2357_s29 = smov 0  }
   0xc LB: > { %s1805_s30 = sadd.s32 4294967295, %s2289_s29   ;;  %s1806_s8 = sadd.s32 4294967294, %s2289_s29   ;;  %s2289_s29 = sphi %s2357_s29, %s25_s29   ;;  %s2285_s28 = sphi %s2355_s28, %s2742_s28   ;;  %s2281_s27 = sphi %s2353_s27, %s2741_s27   ;;  %s2277_s26 = sphi %s2351_s26, %s2740_s26   ;;  %s2273_s25 = sphi %s2349_s25, %s2739_s25   ;;  %s2269_s24 = sphi %s2347_s24, %s2738_s24  }
   0xd   : > { %p57_p0 = scmp.ne.s32.totalorder %s2273_s25, %s2269_s24  ;;  %p2381_p1 = scmp.eq.s32.totalorder %s1805_s30, 0 }
   0xe   : > { %p2385_p2 = scmp.eq.s32.totalorder %s1805_s30, 1  ;;  %p215_p3 = scmp.eq.s32.totalorder %s1806_s8, 1 }
   0xf   : > { %s2722_s9 = scalar_select %p2381_p1, 1, 0 }
  0x10   : > { %p2391_p4 = por %p2381_p1, %p57_p0  ;;  %p1807_p5 = scmp.ge.s32.totalorder %s2289_s29, 1 }
  0x11   : > { %p2396_p6 = por %p215_p3, %p57_p0  ;;  %p222_p7 = scmp.lt.s32.totalorder %s2289_s29, 3 }
  0x12   : > { %s2724_s11 = scalar_select %p2391_p4, 1, 0 }
  0x13   : > { %s2725_s12 = scalar_select %p2396_p6, 1, 0 }
  0x14   : > { %p2401_p8 = pnand %p1807_p5, %p222_p7  ;;  %s2291_s14 = smov [#allocation7]  }
  0x15   : > { %s234_s15 = sshll.u32 %s2291_s14, 4  ;;  %s2292_s17 = smov [#allocation9]   ;;  %s235_s15 = int_to_ptr.vmem [resolvable:$true] %s234_s15 }
  0x16   : > { %s2726_s13 = scalar_select %p2401_p8, 1, 0 }
  0x17   : > { %p1979_p9 = pneg %p2401_p8  ;;  %s250_s18 = sshll.u32 %s2292_s17, 4  ;;  %s251_s18 = int_to_ptr.vmem [resolvable:$true] %s250_s18 }
  0x18   : > { %s2293_s19 = smov [#allocation10]   ;;  %s2106_s21 = scalar_lea.vmem %s235_s15, 256 }
  0x19   : > { %p2410_p11 = pnand %p1979_p9, %p2381_p1  ;;  %s266_s20 = sshll.u32 %s2293_s19, 4  ;;  %s267_s20 = int_to_ptr.vmem [resolvable:$true] %s266_s20 }
  0x1a   : > { %p2107_p13 = scmp.ne.s32.totalorder %s235_s15, %s2106_s21  ;;  %p2114_p5 = scmp.lt.s32.totalorder %s235_s15, %s235_s15 }
  0x1b   : > { %p2097_p12 = pneg %p2410_p11  ;;  %p2115_p7 = scmp.lt.s32.totalorder %s2106_s21, %s2106_s21 }
  0x1d   : > { %p2109_p0 = pnand %p2107_p13, %p2097_p12  ;;  %p2116_p9 = por %p2115_p7, %p2114_p5 }
  0x1f   : > { %p2110_p3 = pneg %p2109_p0 }
  0x21   : > { %p2117_p10 = pnand %p2116_p9, %p2110_p3 }
  0x23   : > { %2120 = shalt.err (!%p2117_p10)
}
  0x24   : > { %s2294_s22 = smov 64   ;;  %s2295_s23 = smov 4  }
  0x25   : > { %s2728_s1 = sld [smem:[#allocation17_spill]]  ;;  %s2132_s14 = scalar_lea.vmem %s251_s18, 256 }
  0x26   : > { %p2133_p6 = scmp.ne.s32.totalorder %s251_s18, %s2132_s14  ;;  %p2140_p1 = scmp.lt.s32.totalorder %s251_s18, %s251_s18 }
  0x27   : > { %p2141_p4 = scmp.lt.s32.totalorder %s2132_s14, %s2132_s14 }
  0x28   : > { %p2135_p13 = pnand %p2133_p6, %p2097_p12 }
  0x29   : > { %p2142_p5 = por %p2141_p4, %p2140_p1 }
  0x2a   : > { %p2136_p0 = pneg %p2135_p13 }
  0x2b   : > { %1982 = dma.hbm_to_vmem [thread:$0]  (!%p2410_p11), %s2728_s1, 256, %s235_s15, [#allocation8], %s2294_s22, %s2294_s22, %s2295_s23  }
  0x2c   : > { %p2143_p3 = pnand %p2142_p5, %p2136_p0 }
  0x2e   : > { %2146 = shalt.err (!%p2143_p3)
}
  0x2f   : > { %s2729_s3 = sld [smem:[#allocation18_spill]]  ;;  %s2158_s15 = scalar_lea.vmem %s267_s20, 256 }
  0x30   : > { %p2159_p10 = scmp.ne.s32.totalorder %s267_s20, %s2158_s15  ;;  %p2166_p9 = scmp.lt.s32.totalorder %s267_s20, %s267_s20 }
  0x31   : > { %p2167_p13 = scmp.lt.s32.totalorder %s2158_s15, %s2158_s15 }
  0x32   : > { %p2161_p7 = pnand %p2159_p10, %p2097_p12 }
  0x33   : > { %p2168_p8 = por %p2167_p13, %p2166_p9 }
  0x34   : > { %p2162_p6 = pneg %p2161_p7 }
  0x35   : > { %1985 = dma.hbm_to_vmem [thread:$0]  (!%p2410_p11), %s2729_s3, 256, %s251_s18, [#allocation8], %s2294_s22, %s2294_s22, %s2295_s23  }
  0x36   : > { %p2169_p1 = pnand %p2168_p8, %p2162_p6 }
  0x38   : > { %2172 = shalt.err (!%p2169_p1)
}
  0x39   : > { %s2730_s5 = sld [smem:[#allocation19_spill]]  ;;  %s44_s18 = sadd.s32 1, %s2277_s26 }
  0x3a   : > { %s37_s8 = sadd.s32 1, %s2285_s28  ;;  %p51_p4 = scmp.ne.s32.totalorder %s2277_s26, %s2273_s25 }
  0x3b   : > { %p39_p8 = scmp.ge.s32.totalorder %s37_s8, 2  ;;  %p52_p12 = scmp.eq.s32.totalorder %s2289_s29, 0 }
  0x3c   : > { %p2447_p0 = por %p2385_p2, %p51_p4  ;;  %p2000_p5 = scmp.lt.s32.totalorder %s2289_s29, 2 }
  0x3d   : > { %s2744_s8 = smov (%p39_p8, %s37_s8), 0  ;;  %p53_p3 = por %p52_p12, %p51_p4 }
  0x3e   : > { %s283_s14 = sand.u32 1, %s2277_s26   ;;  %s41_s17 = ssub.s32 %s2285_s28, %s2744_s8 }
  0x3f   : > { %1988 = dma.hbm_to_vmem [thread:$0]  (!%p2410_p11), %s2730_s5, 256, %s267_s20, [#allocation11], %s2294_s22, %s2294_s22, %s2295_s23  }
  0x40   : > { %p42_p10 = scmp.eq.s32.totalorder %s41_s17, 0  ;;  %s1812_s20 = sshll.u32 %s283_s14, 3 }
  0x41   : > { %s1813_s22 = sshll.u32 %s2285_s28, 7  ;;  %s287_s21 = scalar_lea.vmem [#allocation4], %s1812_s20 }
  0x42   : > { %s2459_s23 = scalar_select %p42_p10, %s2277_s26, %s44_s18  }
  0x43   : > { %s292_s10 = scalar_lea.hbm %s2707_s0, %s1813_s22  ;;  %s294_s30 = sshll.u32 %s287_s21, 4  ;;  %s295_s30 = int_to_ptr.vmem [resolvable:$true] %s294_s30 }
  0x44   : > { %p2466_p2 = pnand %p2000_p5, %p53_p3  ;;  %s284_s3 = scalar_lea.sflag [#allocation5], %s283_s14 }
  0x45   : > { %s2186_s17 = scalar_lea.vmem %s295_s30, 128  ;;  %s2296_s18 = smov [#allocation4]  }
  0x46   : > { %p2175_p11 = pneg %p2466_p2  ;;  %p2187_p7 = scmp.ne.s32.totalorder %s295_s30, %s2186_s17 }
  0x47   : > { %s2191_s5 = sshll.u32 %s2296_s18, 4  ;;  %s2192_s5 = int_to_ptr.vmem [resolvable:$false] %s2191_s5 }
  0x48   : > { %p2189_p6 = pnand %p2187_p7, %p2175_p11  ;;  %s2193_s22 = scalar_lea.vmem %s2192_s5, 256 }
  0x49   : > { %p2194_p13 = scmp.lt.s32.totalorder %s295_s30, %s2192_s5  ;;  %p2195_p1 = scmp.lt.s32.totalorder %s2193_s22, %s2186_s17 }
  0x4a   : > { %p2190_p9 = pneg %p2189_p6 }
  0x4b   : > { %p2196_p4 = por %p2195_p1, %p2194_p13 }
  0x4d   : > { %p2197_p8 = pnand %p2196_p4, %p2190_p9 }
  0x4f   : > { %2200 = shalt.err (!%p2197_p8)
}
  0x50   : > { %1992 = dma.hbm_to_vmem [thread:$0]  (!%p2466_p2), %s292_s10, 128, %s295_s30, %s284_s3  }
  0x51   : > { %p2733_p12 = scmp.ne.s32.totalorder %s2726_s13, 0 }
  0x52   : > { %s2477_s14 = sand.u32 (!%p2733_p12), 1, %s2273_s25   ;;  %p2734_p5 = scmp.ne.s32.totalorder (!%p2733_p12), %s2724_s11, 0 }
  0x53   : > { %303 = sbr.rel (%p2733_p12) target bundleno = 1234 (0x4d2), region = 48  ;;  %s1815_s20 = sshll.u32 (!%p2733_p12), %s2477_s14, 3 }
  0x54   : > { %s306_s19 = scalar_lea.sflag (!%p2733_p12), [#allocation5], %s2477_s14  ;;  %s309_s5 = scalar_lea.vmem (!%p2733_p12), [#allocation4], %s1815_s20 }
  0x58   : > { %2252 = dma.done.wait (%p2734_p5), %s306_s19, 128  }
  0x59   : > { %2254 = vsyncadd (%p2734_p5), %s306_s19, 4294967168  ;;  %p2735_p3 = scmp.ne.s32.totalorder %s2722_s9, 0 }
  0x5b   : > { %2256 = dma.done.wait (%p2735_p3), [#allocation8], 512  }
  0x5c   : > { %2258 = vsyncadd (%p2735_p3), [#allocation8], 4294966784 }
  0x5d   : > { %2260 = dma.done.wait (%p2735_p3), [#allocation11], 256  }
  0x5e   : > { %2262 = vsyncadd (%p2735_p3), [#allocation11], 4294967040  ;;  %v2297_v0 = vmov 0.0   ;;  %vm2298_vm0 = vmmov 0   ;;  %v2067_v1 = vld [vmem:[#allocation9 + $0x8] sm:$0xff]   ;;  %v2068_v2 = vld [vmem:[#allocation9] sm:$0xff]   ;;  %v437_v23 = vlaneseq }
  0x5f   : > { %1875 = vmatprep.subr.bf16.mxu0 %v2297_v0  ;;  %1883 = vmatprep.subr.bf16.mxu1 %v2297_v0  ;;  %v2069_v3 = vld [vmem:[#allocation7 + $0x8] sm:$0xff]   ;;  %v357_v4 = vld [vmem:[%s309_s5] sm:$0xff]  ;;  %v2070_v5 = vld [vmem:[#allocation7] sm:$0xff]   ;;  %vm382_vm1 = vcmask 261120   ;;  %s2299_s13 = smov 104   ;;  %s2300_s15 = smov 120  }
  0x60   : > { %1879 = vmatprep.mubr.msk.bf16.mxu0 %vm2298_vm0, %v2297_v0  ;;  %1887 = vmatprep.mubr.msk.bf16.mxu1 %vm2298_vm0, %v2297_v0  ;;  %v358_v6 = vpack.c.bf16 %v357_v4, %v357_v4  ;;  %v1820_v7 = vld [vmem:[%s2711_s4] ss:$0 sm:$0xff]  ;;  %s2301_s10 = smov 112   ;;  %s2302_s21 = smov 96   ;;  %v2303_v21 = vmov 1983009808  }
  0x61   : > { %1876 = vmatpush3.bf16.msra.mxu0 %v2067_v1  ;;  %1884 = vmatpush3.bf16.msra.mxu1 %v2069_v3  ;;  %v1824_v9 = vld [vmem:[%s2709_s2] ss:$0 sm:$0xff]  ;;  %v435_v22 = vunpack.c.l.s4 %v2303_v21  ;;  %v2304_v24 = vmov 1934713408   ;;  %v438_v27 = vshrl.u32 %v437_v23, 7  ;;  %v2305_v43 = vmov 0  }
  0x62   : > { %1877 = vmatprep.subr.bf16.mxu0 %v2297_v0  ;;  %1885 = vmatprep.subr.bf16.mxu1 %v2297_v0  ;;  %v452_v25 = vunpack.c.l.s4 %v2304_v24  ;;  %vm599_vm2 = vcmask 60416   ;;  %vm1030_vm3 = vcmask 64512   ;;  %vm1278_vm4 = vcmask 1043456   ;;  %s1842_s18 = sshll.u32 %s2281_s27, 7  ;;  %s351_s22 = scalar_lea.vmem [#allocation12], %s1815_s20 }
  0x63   : > { %v436_v26 = vunpack.c.0.s8 %v435_v22  ;;  %s1695_s19 = sshll.u32 %s351_s22, 4  ;;  %s2664_s3 = scalar_lea.hbm %s2714_s7, %s1842_s18  ;;  %s1696_s19 = int_to_ptr.vmem [resolvable:$true] %s1695_s19 }
  0x64   : > { %v453_v28 = vunpack.c.0.s8 %v452_v25  ;;  %s1681_s9 = scalar_lea.sflag [#allocation6], %s2477_s14  ;;  %s2201_s11 = scalar_lea.vmem %s1696_s19, 128 }
  0x65   : > { %1878 = vmatpush3.bf16.msra.mxu0 %v2068_v2  ;;  %1886 = vmatpush3.bf16.msra.mxu1 %v2070_v5  ;;  %v2517_v29 = vsub.s32 %v436_v26, %v438_v27  ;;  %p2202_p10 = scmp.ne.s32.totalorder %s1696_s19, %s2201_s11  ;;  %s2306_s27 = smov [#allocation12]  }
  0x66   : > { %1891 = vmatprep.subr.bf16.mxu0 %v2297_v0  ;;  %1897 = vmatprep.subr.bf16.mxu1 %v2297_v0  ;;  %v2520_v33 = vsub.s32 %v453_v28, %v438_v27  ;;  %s2205_s20 = sshll.u32 %s2306_s27, 4  ;;  %s2206_s20 = int_to_ptr.vmem [resolvable:$false] %s2205_s20 }
  0x67   : > { %p2203_p2 = pnand %p2202_p10, %p2447_p0  ;;  %p2208_p7 = scmp.lt.s32.totalorder %s1696_s19, %s2206_s20 }
  0x68   : > { %1880 = vmatmul.mubr.msk.bf16.vlgmr.msra.gmra.mxu0 %vm382_vm1, %v358_v6  ;;  %1888 = vmatmul.mubr.msk.bf16.vlgmr.msra.gmra.mxu1 %vm382_vm1, %v358_v6 }
  0x69   : > { %1893 = vmatprep.mubr.msk.bf16.mxu0 %vm2298_vm0, %v2297_v0  ;;  %1899 = vmatprep.mubr.msk.bf16.mxu1 %vm2298_vm0, %v2297_v0  ;;  %p2204_p11 = pneg %p2203_p2 }
 0x128   : > { %v420_v8 = vpop.f32.mrf.mxu0  ;;  %v847_v12 = vpop.f32.mrf.mxu1 }
 0x129   : > { %v421_v10 = vadd.f32 %v1820_v7, %v420_v8  ;;  %v848_v14 = vadd.f32 %v1824_v9, %v847_v12 }
 0x12a   : > { %v1881_v11 = vpop.f32.mrf.mxu0  ;;  %v1889_v16 = vpop.f32.mrf.mxu1 }
 0x12b   : > { %v426_v13 = vpack.c.bf16 %v421_v10, %v421_v10  ;;  %v853_v17 = vpack.c.bf16 %v848_v14, %v848_v14 }
 0x12c   : > { %v423_v15 = vpop.f32.mrf.mxu0  ;;  %v850_v19 = vpop.f32.mrf.mxu1 }
 0x12d   : > { %432 = vrot.lane.b32.xlu1 %v426_v13, %s2299_s13  ;;  %428 = vrot.lane.b32.xlu0 %v426_v13, %s2300_s15  ;;  %v440_v42 = vrot.slane %v426_v13, %v2517_v29  ;;  %v867_v50 = vrot.slane %v853_v17, %v2517_v29 }
 0x12e   : > { %v1882_v18 = vpop.f32.mrf.mxu0  ;;  %v1890_v20 = vpop.f32.mrf.mxu1 }
 0x131   : > { %855 = vrot.lane.b32.xlu1 %v853_v17, %s2300_s15  ;;  %430 = vrot.lane.b32.xlu0 %v426_v13, %s2301_s10 }
 0x135   : > { %859 = vrot.lane.b32.xlu1 %v853_v17, %s2299_s13  ;;  %857 = vrot.lane.b32.xlu0 %v853_v17, %s2301_s10  ;;  %s2207_s13 = scalar_lea.vmem %s2206_s20, 256 }
 0x136   : > { %p2209_p6 = scmp.lt.s32.totalorder %s2207_s13, %s2201_s11 }
 0x138   : > { %p2210_p9 = por %p2209_p6, %p2208_p7 }
 0x139   : > { %604 = vrot.lane.b32.xlu0 %v426_v13, %s2302_s21 }
 0x13a   : > { %p2211_p13 = pnand %p2210_p9, %p2204_p11 }
 0x19f   : > { %v433_v30 = vpop.permute.xlu1 %432  ;;  %v429_v31 = vpop.permute.xlu0 %428 }
 0x1a0   : > { %v482_v32 = vrot.slane %v433_v30, %v2517_v29  ;;  %v474_v34 = vrot.slane %v429_v31, %v2517_v29  ;;  %606 = vrot.lane.b32.xlu1 %v429_v31, %s2302_s21 }
 0x1a2   : > { %v483_v35 = vcombine.low %v474_v34, %v482_v32  ;;  %v484_v36 = vcombine.high %v474_v34, %v482_v32 }
 0x1a3   : > { %v856_v37 = vpop.permute.xlu1 %855  ;;  %v431_v38 = vpop.permute.xlu0 %430 }
 0x1a4   : > { %v491_v39 = vrot.slane %v483_v35, %v2520_v33  ;;  %v498_v40 = vrot.slane %v484_v36, %v2520_v33  ;;  %v448_v41 = vrot.slane %v431_v38, %v2517_v29  ;;  %610 = vrot.lane.b32.xlu1 %v433_v30, %s2302_s21  ;;  %608 = vrot.lane.b32.xlu0 %v431_v38, %s2302_s21 }
 0x1a5   : > { %v901_v46 = vrot.slane %v856_v37, %v2517_v29 }
 0x1a6   : > { %v499_v44 = vcombine.high %v491_v39, %v2305_v43  ;;  %v500_v45 = vcombine.high %v498_v40, %v2305_v43  ;;  %v449_v47 = vcombine.low %v440_v42, %v448_v41  ;;  %v450_v48 = vcombine.high %v440_v42, %v448_v41 }
 0x1a7   : > { %v860_v49 = vpop.permute.xlu1 %859  ;;  %v858_v51 = vpop.permute.xlu0 %857  ;;  %v506_v52 = vshrl.u32 %v491_v39, 16  ;;  %v522_v53 = vshrl.u32 %v498_v40, 16 }
 0x1a8   : > { %v909_v54 = vrot.slane %v860_v49, %v2517_v29  ;;  %v875_v55 = vrot.slane %v858_v51, %v2517_v29  ;;  %v514_v56 = vshrl.u32 %v499_v44, 16  ;;  %v530_v57 = vshrl.u32 %v500_v45, 16 }
 0x1a9   : > { %v457_v58 = vrot.slane %v449_v47, %v2520_v33  ;;  %v464_v59 = vrot.slane %v450_v48, %v2520_v33 }
 0x1aa   : > { %v910_v60 = vcombine.low %v901_v46, %v909_v54  ;;  %v911_v61 = vcombine.high %v901_v46, %v909_v54  ;;  %v876_v62 = vcombine.low %v867_v50, %v875_v55  ;;  %v877_v63 = vcombine.high %v867_v50, %v875_v55 }
 0x1ab   : > { %v465_v1 = vcombine.high %v457_v58, %v2305_v43  ;;  %v466_v2 = vcombine.high %v464_v59, %v2305_v43  ;;  %v503_v3 = vpack.i.b16 %v491_v39, %v457_v58  ;;  %v505_v4 = vshrl.u32 %v457_v58, 16 }
 0x1ac   : > { %v519_v5 = vpack.i.b16 %v498_v40, %v464_v59  ;;  %v521_v6 = vshrl.u32 %v464_v59, 16  ;;  %v918_v7 = vrot.slane %v910_v60, %v2520_v33  ;;  %v925_v8 = vrot.slane %v911_v61, %v2520_v33 }
 0x1ad   : > { %v507_v9 = vpack.i.b16 %v506_v52, %v505_v4  ;;  %v511_v10 = vpack.i.b16 %v499_v44, %v465_v1  ;;  %v513_v11 = vshrl.u32 %v465_v1, 16  ;;  %v527_v12 = vpack.i.b16 %v500_v45, %v466_v2 }
 0x1ae   : > { %v523_v13 = vpack.i.b16 %v522_v53, %v521_v6  ;;  %v529_v14 = vshrl.u32 %v466_v2, 16  ;;  %v533_v15 = vcombine.low %v503_v3, %v519_v5  ;;  %v926_v16 = vcombine.high %v918_v7, %v2305_v43 }
 0x1af   : > { %v515_v17 = vpack.i.b16 %v514_v56, %v513_v11  ;;  %v541_v18 = vcombine.low %v511_v10, %v527_v12  ;;  %v927_v19 = vcombine.high %v925_v8, %v2305_v43  ;;  %v933_v24 = vshrl.u32 %v918_v7, 16 }
 0x1b0   : > { %v531_v20 = vpack.i.b16 %v530_v57, %v529_v14  ;;  %v558_v21 = vcombine.low %v507_v9, %v523_v13  ;;  %v540_v22 = vrot.slane %v533_v15, %v2517_v29  ;;  %v884_v25 = vrot.slane %v876_v62, %v2520_v33 }
 0x1b1   : > { %v548_v23 = vrot.slane %v541_v18, %v2517_v29  ;;  %v941_v27 = vshrl.u32 %v926_v16, 16  ;;  %v949_v28 = vshrl.u32 %v925_v8, 16  ;;  %v891_v30 = vrot.slane %v877_v63, %v2520_v33 }
 0x1b2   : > { %v566_v26 = vcombine.low %v515_v17, %v531_v20  ;;  %v957_v32 = vshrl.u32 %v927_v19, 16  ;;  %v892_v34 = vcombine.high %v884_v25, %v2305_v43  ;;  %v932_v35 = vshrl.u32 %v884_v25, 16 }
 0x1b3   : > { %v549_v31 = vcombine.low %v540_v22, %v548_v23  ;;  %v565_v36 = vrot.slane %v558_v21, %v2517_v29  ;;  %v893_v38 = vcombine.high %v891_v30, %v2305_v43  ;;  %v948_v39 = vshrl.u32 %v891_v30, 16 }
 0x1b4   : > { %v573_v37 = vrot.slane %v566_v26, %v2517_v29  ;;  %v934_v41 = vpack.i.b16 %v933_v24, %v932_v35  ;;  %v938_v42 = vpack.i.b16 %v926_v16, %v892_v34  ;;  %v940_v44 = vshrl.u32 %v892_v34, 16  ;;  %v605_v34 = vpop.permute.xlu0 %604 }
 0x1b5   : > { %v556_v40 = vrot.slane %v549_v31, %v2520_v33  ;;  %v950_v46 = vpack.i.b16 %v949_v28, %v948_v39  ;;  %v954_v47 = vpack.i.b16 %v927_v19, %v893_v38  ;;  %v956_v48 = vshrl.u32 %v893_v38, 16 }
 0x1b6   : > { %v574_v45 = vcombine.low %v565_v36, %v573_v37  ;;  %v930_v49 = vpack.i.b16 %v918_v7, %v884_v25  ;;  %v942_v50 = vpack.i.b16 %v941_v27, %v940_v44  ;;  %v946_v51 = vpack.i.b16 %v925_v8, %v891_v30 }
 0x1b7   : > { %v557_v52 = vcombine.high %v556_v40, %v2305_v43  ;;  %v958_v54 = vpack.i.b16 %v957_v32, %v956_v48  ;;  %v587_v55 = vshrl.u32 %v556_v40, 16  ;;  %v968_v56 = vcombine.low %v938_v42, %v954_v47 }
 0x1b8   : > { %v581_v53 = vrot.slane %v574_v45, %v2520_v33  ;;  %v985_v60 = vcombine.low %v934_v41, %v950_v46  ;;  %v960_v61 = vcombine.low %v930_v49, %v946_v51  ;;  %v619_v39 = vrot.slane %v605_v34, %v2517_v29 }
 0x1b9   : > { %v993_v62 = vcombine.low %v942_v50, %v958_v54  ;;  %v595_v2 = vshrl.u32 %v557_v52, 16  ;;  %v975_v6 = vrot.slane %v968_v56, %v2517_v29 }
 0x1ba   : > { %v582_v57 = vcombine.high %v581_v53, %v2305_v43  ;;  %v585_v58 = vpack.i.b16 %v581_v53, %v556_v40  ;;  %v588_v59 = vshrl.u32 %v581_v53, 16  ;;  %v992_v7 = vrot.slane %v985_v60, %v2517_v29 }
 0x1bb   : > { %v1000_v4 = vrot.slane %v993_v62, %v2517_v29  ;;  %v967_v8 = vrot.slane %v960_v61, %v2517_v29 }
 0x1bc   : > { %v589_v63 = vpack.i.b16 %v588_v59, %v587_v55  ;;  %v593_v1 = vpack.i.b16 %v582_v57, %v557_v52  ;;  %v596_v3 = vshrl.u32 %v582_v57, 16  ;;  %600 = vst.msk [vmem:[#allocation2] sm:$0xf] %vm599_vm2, %v585_v58 }
 0x1bd   : > { %v1001_v9 = vcombine.low %v992_v7, %v1000_v4  ;;  %v976_v10 = vcombine.low %v967_v8, %v975_v6 }
 0x1be   : > { %v597_v5 = vpack.i.b16 %v596_v3, %v595_v2  ;;  %601 = vst.msk [vmem:[#allocation2 + $0x4] sm:$0xf] %vm599_vm2, %v589_v63  ;;  %602 = vst.msk [vmem:[#allocation2 + $0x8] sm:$0xf] %vm599_vm2, %v593_v1 }
 0x1bf   : > { %v1008_v13 = vrot.slane %v1001_v9, %v2520_v33  ;;  %v983_v16 = vrot.slane %v976_v10, %v2520_v33 }
 0x1c0   : > { %603 = vst.msk [vmem:[#allocation2 + $0xc] sm:$0xf] %vm599_vm2, %v597_v5 }
 0x1c1   : > { %v1014_v17 = vshrl.u32 %v1008_v13, 16  ;;  %v1012_v19 = vpack.i.b16 %v1008_v13, %v983_v16  ;;  %v1013_v20 = vshrl.u32 %v983_v16, 16  ;;  %v1009_v24 = vcombine.high %v1008_v13, %v2305_v43 }
 0x1c2   : > { %v984_v26 = vcombine.high %v983_v16, %v2305_v43 }
 0x1c3   : > { %v1022_v11 = vld [vmem:[#allocation2] sm:$0xf]  ;;  %v1015_v23 = vpack.i.b16 %v1014_v17, %v1013_v20  ;;  %v1020_v27 = vshrl.u32 %v1009_v24, 16 }
 0x1c4   : > { %v1035_v12 = vsel %vm1030_vm3, %v1022_v11, 0  ;;  %v1018_v28 = vpack.i.b16 %v1009_v24, %v984_v26  ;;  %v1019_v30 = vshrl.u32 %v984_v26, 16 }
 0x1c5   : > { %1892 = vmatpush3.bf16.xpose.msra.mxu0 %v1035_v12  ;;  %v1023_v14 = vld [vmem:[#allocation2 + $0x4] sm:$0xf]  ;;  %v1024_v18 = vld [vmem:[#allocation2 + $0x8] sm:$0xf] }
 0x1c6   : > { %v1081_v15 = vsel %vm1030_vm3, %v1023_v14, 0  ;;  %1903 = vmatprep.subr.bf16.mxu0 %v2297_v0  ;;  %v1127_v22 = vsel %vm1030_vm3, %v1024_v18, 0  ;;  %v1021_v31 = vpack.i.b16 %v1020_v27, %v1019_v30 }
 0x1c7   : > { %1898 = vmatpush3.bf16.xpose.msra.mxu1 %v1081_v15  ;;  %v1025_v21 = vld [vmem:[#allocation2 + $0xc] sm:$0xf] }
 0x1c8   : > { %1909 = vmatprep.subr.bf16.mxu1 %v2297_v0  ;;  %v1173_v25 = vsel %vm1030_vm3, %v1025_v21, 0 }
 0x1cc   : > { %1894 = vmatmul.mubr.msk.bf16.vlgmr.msra.gmra.mxu0 %vm1030_vm3, %v1012_v19 }
 0x1cd   : > { %1904 = vmatpush3.bf16.xpose.msra.mxu0 %v1127_v22  ;;  %1905 = vmatprep.mubr.msk.bf16.mxu0 %vm2298_vm0, %v2297_v0 }
 0x1ce   : > { %1900 = vmatmul.mubr.msk.bf16.vlgmr.msra.gmra.mxu1 %vm1030_vm3, %v1015_v23  ;;  %1915 = vmatprep.subr.bf16.mxu0 %v2297_v0 }
 0x1cf   : > { %1910 = vmatpush3.bf16.xpose.msra.mxu1 %v1173_v25  ;;  %1911 = vmatprep.mubr.msk.bf16.mxu1 %vm2298_vm0, %v2297_v0 }
 0x1d0   : > { %1921 = vmatprep.subr.bf16.mxu1 %v2297_v0 }
 0x1d4   : > { %1906 = vmatmul.mubr.msk.bf16.vlgmr.msra.gmra.mxu0 %vm1030_vm3, %v1018_v28 }
 0x1d5   : > { %1917 = vmatprep.mubr.msk.bf16.mxu0 %vm2298_vm0, %v2297_v0 }
 0x1d6   : > { %1912 = vmatmul.mubr.msk.bf16.vlgmr.msra.gmra.mxu1 %vm1030_vm3, %v1021_v31 }
 0x1d7   : > { %1923 = vmatprep.mubr.msk.bf16.mxu1 %vm2298_vm0, %v2297_v0 }
 0x212   : > { %v607_v32 = vpop.permute.xlu1 %606 }
 0x213   : > { %v653_v36 = vrot.slane %v607_v32, %v2517_v29 }
 0x216   : > { %v611_v35 = vpop.permute.xlu1 %610  ;;  %v609_v38 = vpop.permute.xlu0 %608 }
 0x217   : > { %v661_v37 = vrot.slane %v611_v35, %v2517_v29  ;;  %v627_v40 = vrot.slane %v609_v38, %v2517_v29 }
 0x219   : > { %v662_v41 = vcombine.low %v653_v36, %v661_v37  ;;  %v663_v42 = vcombine.high %v653_v36, %v661_v37  ;;  %v628_v44 = vcombine.low %v619_v39, %v627_v40  ;;  %v629_v45 = vcombine.high %v619_v39, %v627_v40 }
 0x21b   : > { %v670_v46 = vrot.slane %v662_v41, %v2520_v33  ;;  %v677_v47 = vrot.slane %v663_v42, %v2520_v33  ;;  %v636_v48 = vrot.slane %v628_v44, %v2520_v33  ;;  %v643_v49 = vrot.slane %v629_v45, %v2520_v33 }
 0x21d   : > { %v678_v50 = vcombine.high %v670_v46, %v2305_v43  ;;  %v679_v51 = vcombine.high %v677_v47, %v2305_v43  ;;  %v685_v52 = vshrl.u32 %v670_v46, 16  ;;  %v701_v53 = vshrl.u32 %v677_v47, 16 }
 0x21e   : > { %v644_v54 = vcombine.high %v636_v48, %v2305_v43  ;;  %v645_v55 = vcombine.high %v643_v49, %v2305_v43  ;;  %v682_v56 = vpack.i.b16 %v670_v46, %v636_v48  ;;  %v684_v57 = vshrl.u32 %v636_v48, 16 }
 0x21f   : > { %v693_v58 = vshrl.u32 %v678_v50, 16  ;;  %v709_v59 = vshrl.u32 %v679_v51, 16  ;;  %v698_v60 = vpack.i.b16 %v677_v47, %v643_v49  ;;  %v700_v61 = vshrl.u32 %v643_v49, 16 }
 0x220   : > { %v686_v62 = vpack.i.b16 %v685_v52, %v684_v57  ;;  %v690_v63 = vpack.i.b16 %v678_v50, %v644_v54  ;;  %v692_v1 = vshrl.u32 %v644_v54, 16  ;;  %v706_v2 = vpack.i.b16 %v679_v51, %v645_v55 }
 0x221   : > { %v702_v3 = vpack.i.b16 %v701_v53, %v700_v61  ;;  %v708_v4 = vshrl.u32 %v645_v55, 16  ;;  %v712_v5 = vcombine.low %v682_v56, %v698_v60 }
 0x222   : > { %v694_v6 = vpack.i.b16 %v693_v58, %v692_v1  ;;  %v720_v7 = vcombine.low %v690_v63, %v706_v2 }
 0x223   : > { %v710_v8 = vpack.i.b16 %v709_v59, %v708_v4  ;;  %v737_v9 = vcombine.low %v686_v62, %v702_v3  ;;  %v719_v10 = vrot.slane %v712_v5, %v2517_v29 }
 0x224   : > { %v727_v11 = vrot.slane %v720_v7, %v2517_v29 }
 0x225   : > { %v745_v12 = vcombine.low %v694_v6, %v710_v8  ;;  %v744_v14 = vrot.slane %v737_v9, %v2517_v29 }
 0x226   : > { %v728_v13 = vcombine.low %v719_v10, %v727_v11 }
 0x227   : > { %v752_v15 = vrot.slane %v745_v12, %v2517_v29 }
 0x228   : > { %v735_v16 = vrot.slane %v728_v13, %v2520_v33 }
 0x229   : > { %v753_v17 = vcombine.low %v744_v14, %v752_v15 }
 0x22a   : > { %v736_v18 = vcombine.high %v735_v16, %v2305_v43  ;;  %v766_v22 = vshrl.u32 %v735_v16, 16 }
 0x22b   : > { %v760_v19 = vrot.slane %v753_v17, %v2520_v33 }
 0x22c   : > { %v774_v26 = vshrl.u32 %v736_v18, 16 }
 0x22d   : > { %v761_v20 = vcombine.high %v760_v19, %v2305_v43  ;;  %v764_v21 = vpack.i.b16 %v760_v19, %v735_v16  ;;  %v767_v23 = vshrl.u32 %v760_v19, 16 }
 0x22f   : > { %v768_v24 = vpack.i.b16 %v767_v23, %v766_v22  ;;  %v772_v25 = vpack.i.b16 %v761_v20, %v736_v18  ;;  %v775_v27 = vshrl.u32 %v761_v20, 16  ;;  %778 = vst.msk [vmem:[#allocation3] sm:$0xf] %vm599_vm2, %v764_v21  ;;  %v1476_v18 = vld [vmem:[#allocation10] sm:$0xf] }
 0x230   : > { %v1484_v19 = vsel %vm1278_vm4, %v1476_v18, 0  ;;  %v1477_v20 = vld [vmem:[#allocation10 + $0x4] sm:$0xf] }
 0x231   : > { %v776_v28 = vpack.i.b16 %v775_v27, %v774_v26  ;;  %779 = vst.msk [vmem:[#allocation3 + $0x4] sm:$0xf] %vm599_vm2, %v768_v24  ;;  %780 = vst.msk [vmem:[#allocation3 + $0x8] sm:$0xf] %vm599_vm2, %v772_v25  ;;  %v1530_v21 = vsel %vm1278_vm4, %v1477_v20, 0 }
 0x233   : > { %781 = vst.msk [vmem:[#allocation3 + $0xc] sm:$0xf] %vm599_vm2, %v776_v28 }
 0x236   : > { %v1026_v29 = vld [vmem:[#allocation3] sm:$0xf] }
 0x237   : > { %v1280_v33 = vsel %vm1278_vm4, %v1026_v29, 0 }
 0x238   : > { %1916 = vmatpush3.bf16.msra.mxu0 %v1280_v33  ;;  %v1027_v43 = vld [vmem:[#allocation3 + $0x4] sm:$0xf]  ;;  %v1028_v3 = vld [vmem:[#allocation3 + $0x8] sm:$0xf] }
 0x239   : > { %v1326_v30 = vsel %vm1278_vm4, %v1027_v43, 0  ;;  %1927 = vmatprep.subr.bf16.mxu0 %v2297_v0  ;;  %v1372_v8 = vsel %vm1278_vm4, %v1028_v3, 0 }
 0x23a   : > { %1922 = vmatpush3.bf16.msra.mxu1 %v1326_v30  ;;  %v1029_v7 = vld [vmem:[#allocation3 + $0xc] sm:$0xf] }
 0x23b   : > { %1933 = vmatprep.subr.bf16.mxu1 %v2297_v0  ;;  %v1418_v11 = vsel %vm1278_vm4, %v1029_v7, 0 }
 0x28c   : > { %v1071_v31 = vpop.f32.mrf.mxu0 }
 0x28d   : > { %v1215_v32 = vsel %vm1030_vm3, %v1071_v31, -inf }
 0x28e   : > { %v1117_v34 = vpop.f32.mrf.mxu1  ;;  %1216 = vmax.xlane.f32.xlu0 %v1215_v32  ;;  %v1895_v35 = vpop.f32.mrf.mxu0 }
 0x28f   : > { %v1218_v36 = vsel %vm1030_vm3, %v1117_v34, -inf }
 0x290   : > { %1219 = vmax.xlane.f32.xlu1 %v1218_v36  ;;  %v1074_v37 = vpop.f32.mrf.mxu0  ;;  %v1901_v38 = vpop.f32.mrf.mxu1 }
 0x292   : > { %v1896_v39 = vpop.f32.mrf.mxu0  ;;  %v1120_v40 = vpop.f32.mrf.mxu1 }
 0x294   : > { %v1902_v41 = vpop.f32.mrf.mxu1  ;;  %v1163_v42 = vpop.f32.mrf.mxu0 }
 0x295   : > { %v1221_v44 = vsel %vm1030_vm3, %v1163_v42, -inf }
 0x296   : > { %v1209_v45 = vpop.f32.mrf.mxu1  ;;  %1222 = vmax.xlane.f32.xlu0 %v1221_v44  ;;  %v1907_v46 = vpop.f32.mrf.mxu0 }
 0x297   : > { %v1224_v49 = vsel %vm1030_vm3, %v1209_v45, -inf }
 0x298   : > { %v1166_v47 = vpop.f32.mrf.mxu0  ;;  %v1913_v48 = vpop.f32.mrf.mxu1 }
 0x29a   : > { %v1212_v50 = vpop.f32.mrf.mxu1  ;;  %1225 = vmax.xlane.f32.xlu0 %v1224_v49  ;;  %v1908_v51 = vpop.f32.mrf.mxu0 }
 0x29b   : > { %v1478_v51 = vld [vmem:[#allocation10 + $0x8] sm:$0xf] }
 0x29c   : > { %v1914_v52 = vpop.f32.mrf.mxu1 }
 0x317   : > { %v1217_v53 = vpop.xlane.xlu0 %1216 }
 0x318   : > { %v1239_v54 = vsub.f32 %v1071_v31, %v1217_v53  ;;  %v1227_v22 = vsub.f32 -inf, %v1217_v53 }
 0x319   : > { %v1220_v55 = vpop.xlane.xlu1 %1219 }
 0x31a   : > { %v1243_v56 = vmul.f32 1.442695, %v1239_v54  ;;  %v1240_v57 = vsub.f32 %v1117_v34, %v1220_v55  ;;  %v1228_v23 = vsub.f32 -inf, %v1220_v55  ;;  %v1231_v24 = vmul.f32 1.442695, %v1227_v22 }
 0x31c   : > { %v1245_v58 = vmul.f32 1.442695, %v1240_v57  ;;  %2071 = vpow2.f32 %v1243_v56  ;;  %v1233_v25 = vmul.f32 1.442695, %v1228_v23  ;;  %v1479_v57 = vld [vmem:[#allocation10 + $0xc] sm:$0xf] }
 0x31e   : > { %2073 = vpow2.f32 %v1245_v58 }
 0x31f   : > { %v1223_v59 = vpop.xlane.xlu0 %1222 }
 0x320   : > { %v1241_v60 = vsub.f32 %v1163_v42, %v1223_v59  ;;  %v1229_v26 = vsub.f32 -inf, %v1223_v59 }
 0x322   : > { %v1247_v61 = vmul.f32 1.442695, %v1241_v60  ;;  %v1235_v27 = vmul.f32 1.442695, %v1229_v26  ;;  %v1576_v60 = vsel %vm1278_vm4, %v1478_v51, 0 }
 0x323   : > { %v1226_v62 = vpop.xlane.xlu0 %1225 }
 0x324   : > { %v1242_v63 = vsub.f32 %v1209_v45, %v1226_v62  ;;  %2075 = vpow2.f32 %v1247_v61  ;;  %v1230_v28 = vsub.f32 -inf, %v1226_v62 }
 0x326   : > { %v1249_v1 = vmul.f32 1.442695, %v1242_v63  ;;  %v1237_v29 = vmul.f32 1.442695, %v1230_v28 }
 0x328   : > { %2077 = vpow2.f32 %v1249_v1  ;;  %v1622_v1 = vsel %vm1278_vm4, %v1479_v57, 0 }
 0x329   : > { %v2072_v2 = vpop.eup %2071  ;;  %2079 = vpow2.f32 %v1231_v24 }
 0x32a   : > { %v1255_v4 = vsel %vm1030_vm3, %v2072_v2, 0.0  ;;  %v1271_v5 = vpack.c.bf16 %v2072_v2, %v2072_v2  ;;  %2081 = vpow2.f32 %v1233_v25 }
 0x32b   : > { %v2074_v6 = vpop.eup %2073  ;;  %1256 = vadd.xlane.f32.xlu1 %v1255_v4  ;;  %2083 = vpow2.f32 %v1235_v27 }
 0x32c   : > { %1918 = vmatmul.mubr.msk.bf16.vlgmr.msra.gmra.mxu0 %vm1030_vm3, %v1271_v5  ;;  %v1258_v9 = vsel %vm1030_vm3, %v2074_v6, 0.0  ;;  %v1272_v10 = vpack.c.bf16 %v2074_v6, %v2074_v6  ;;  %2085 = vpow2.f32 %v1237_v29 }
 0x32d   : > { %1928 = vmatpush3.bf16.msra.mxu0 %v1372_v8  ;;  %1259 = vadd.xlane.f32.xlu0 %v1258_v9 }
 0x32e   : > { %1924 = vmatmul.mubr.msk.bf16.vlgmr.msra.gmra.mxu1 %vm1030_vm3, %v1272_v10  ;;  %1929 = vmatprep.mubr.msk.bf16.mxu0 %vm2298_vm0, %v2297_v0 }
 0x32f   : > { %1934 = vmatpush3.bf16.msra.mxu1 %v1418_v11  ;;  %1935 = vmatprep.mubr.msk.bf16.mxu1 %vm2298_vm0, %v2297_v0 }
 0x330   : > { %1939 = vmatprep.subr.bf16.mxu0 %v2297_v0  ;;  %1945 = vmatprep.subr.bf16.mxu1 %v2297_v0 }
 0x331   : > { %v2076_v12 = vpop.eup %2075 }
 0x332   : > { %v1261_v13 = vsel %vm1030_vm3, %v2076_v12, 0.0  ;;  %v1273_v14 = vpack.c.bf16 %v2076_v12, %v2076_v12 }
 0x333   : > { %1262 = vadd.xlane.f32.xlu1 %v1261_v13 }
 0x334   : > { %1930 = vmatmul.mubr.msk.bf16.vlgmr.msra.gmra.mxu0 %vm1030_vm3, %v1273_v14 }
 0x335   : > { %v2078_v15 = vpop.eup %2077  ;;  %1941 = vmatprep.mubr.msk.bf16.mxu0 %vm2298_vm0, %v2297_v0  ;;  %1940 = vmatpush3.bf16.msra.mxu0 %v1484_v19 }
 0x336   : > { %v1264_v16 = vsel %vm1030_vm3, %v2078_v15, 0.0  ;;  %v1274_v17 = vpack.c.bf16 %v2078_v15, %v2078_v15  ;;  %1951 = vmatprep.subr.bf16.mxu0 %v2297_v0  ;;  %v2080_v33 = vpop.eup %2079 }
 0x337   : > { %1265 = vadd.xlane.f32.xlu0 %v1264_v16  ;;  %v2082_v43 = vpop.eup %2081  ;;  %v1251_v31 = vmul.f32 0.0, %v2080_v33 }
 0x338   : > { %1936 = vmatmul.mubr.msk.bf16.vlgmr.msra.gmra.mxu1 %vm1030_vm3, %v1274_v17  ;;  %v1252_v35 = vmul.f32 0.0, %v2082_v43  ;;  %v2084_v37 = vpop.eup %2083 }
 0x339   : > { %1947 = vmatprep.mubr.msk.bf16.mxu1 %vm2298_vm0, %v2297_v0  ;;  %1946 = vmatpush3.bf16.msra.mxu1 %v1530_v21  ;;  %v1253_v39 = vmul.f32 0.0, %v2084_v37  ;;  %v2086_v40 = vpop.eup %2085 }
 0x33a   : > { %1957 = vmatprep.subr.bf16.mxu1 %v2297_v0  ;;  %v1254_v44 = vmul.f32 0.0, %v2086_v40 }
 0x3b4   : > { %v1257_v30 = vpop.xlane.xlu1 %1256 }
 0x3b5   : > { %v1267_v34 = vadd.f32 %v1257_v30, %v1251_v31 }
 0x3b6   : > { %v1260_v32 = vpop.xlane.xlu0 %1259 }
 0x3b7   : > { %v1268_v36 = vadd.f32 %v1260_v32, %v1252_v35  ;;  %2087 = vrcp.f32 %v1267_v34 }
 0x3b9   : > { %2089 = vrcp.f32 %v1268_v36 }
 0x3bc   : > { %v1263_v38 = vpop.xlane.xlu1 %1262 }
 0x3bd   : > { %v1269_v41 = vadd.f32 %v1263_v38, %v1253_v39 }
 0x3bf   : > { %2091 = vrcp.f32 %v1269_v41 }
 0x3c0   : > { %v1266_v42 = vpop.xlane.xlu0 %1265 }
 0x3c1   : > { %v1270_v45 = vadd.f32 %v1266_v42, %v1254_v44 }
 0x3c3   : > { %2093 = vrcp.f32 %v1270_v45 }
 0x3c4   : > { %v2088_v48 = vpop.eup %2087 }
 0x3c6   : > { %v2090_v54 = vpop.eup %2089 }
 0x3cc   : > { %v2092_v5 = vpop.eup %2091 }
 0x3d0   : > { %v2094_v12 = vpop.eup %2093 }
 0x3ec   : > { %v1316_v46 = vpop.f32.mrf.mxu0 }
 0x3ed   : > { %v1460_v47 = vadd.f32 %v1316_v46, %v1251_v31 }
 0x3ee   : > { %v1919_v49 = vpop.f32.mrf.mxu0  ;;  %v1362_v50 = vpop.f32.mrf.mxu1 }
 0x3ef   : > { %v1468_v52 = vmul.f32 %v2088_v48, %v1460_v47  ;;  %v1461_v53 = vadd.f32 %v1362_v50, %v1252_v35  ;;  %v1840_v35 = vld [vmem:[%s2713_s6] ss:$0 sm:$0xff] }
 0x3f0   : > { %v1319_v55 = vpop.f32.mrf.mxu0  ;;  %v1925_v56 = vpop.f32.mrf.mxu1 }
 0x3f1   : > { %v1472_v58 = vpack.c.bf16 %v1468_v52, %v1468_v52  ;;  %v1469_v59 = vmul.f32 %v2090_v54, %v1461_v53 }
 0x3f2   : > { %v1920_v61 = vpop.f32.mrf.mxu0  ;;  %v1365_v62 = vpop.f32.mrf.mxu1 }
 0x3f3   : > { %v1473_v63 = vpack.c.bf16 %v1469_v59, %v1469_v59  ;;  %1942 = vmatmul.mubr.msk.bf16.vlgmr.msra.gmra.mxu0 %vm1030_vm3, %v1472_v58 }
 0x3f4   : > { %v1926_v2 = vpop.f32.mrf.mxu1  ;;  %v1408_v3 = vpop.f32.mrf.mxu0  ;;  %1952 = vmatpush3.bf16.msra.mxu0 %v1576_v60  ;;  %1953 = vmatprep.mubr.msk.bf16.mxu0 %vm2298_vm0, %v2297_v0 }
 0x3f5   : > { %v1462_v4 = vadd.f32 %v1408_v3, %v1253_v39  ;;  %1948 = vmatmul.mubr.msk.bf16.vlgmr.msra.gmra.mxu1 %vm1030_vm3, %v1473_v63 }
 0x3f6   : > { %v1931_v6 = vpop.f32.mrf.mxu0  ;;  %1958 = vmatpush3.bf16.msra.mxu1 %v1622_v1  ;;  %1959 = vmatprep.mubr.msk.bf16.mxu1 %vm2298_vm0, %v2297_v0 }
 0x3f7   : > { %v1470_v7 = vmul.f32 %v2092_v5, %v1462_v4 }
 0x3f8   : > { %v1411_v8 = vpop.f32.mrf.mxu0  ;;  %v1454_v9 = vpop.f32.mrf.mxu1 }
 0x3f9   : > { %v1474_v10 = vpack.c.bf16 %v1470_v7, %v1470_v7  ;;  %v1463_v11 = vadd.f32 %v1454_v9, %v1254_v44 }
 0x3fa   : > { %v1932_v13 = vpop.f32.mrf.mxu0  ;;  %v1937_v14 = vpop.f32.mrf.mxu1 }
 0x3fb   : > { %v1471_v15 = vmul.f32 %v2094_v12, %v1463_v11  ;;  %1954 = vmatmul.mubr.msk.bf16.vlgmr.msra.gmra.mxu0 %vm1030_vm3, %v1474_v10 }
 0x3fc   : > { %v1457_v16 = vpop.f32.mrf.mxu1 }
 0x3fd   : > { %v1475_v17 = vpack.c.bf16 %v1471_v15, %v1471_v15 }
 0x3fe   : > { %v1938_v18 = vpop.f32.mrf.mxu1 }
 0x3ff   : > { %1960 = vmatmul.mubr.msk.bf16.vlgmr.msra.gmra.mxu1 %vm1030_vm3, %v1475_v17 }
 0x4b3   : > { %v1520_v19 = vpop.f32.mrf.mxu0 }
 0x4b4   : > { %v1664_v28 = vsel %vm382_vm1, %v1520_v19, 0.0 }
 0x4b5   : > { %v1943_v20 = vpop.f32.mrf.mxu0  ;;  %v1566_v21 = vpop.f32.mrf.mxu1 }
 0x4b6   : > { %v1665_v25 = vsel %vm382_vm1, %v1566_v21, 0.0 }
 0x4b7   : > { %v1523_v0 = vpop.f32.mrf.mxu0  ;;  %v1949_v22 = vpop.f32.mrf.mxu1  ;;  %v1666_v33 = vadd.f32 %v1665_v25, %v1664_v28 }
 0x4b9   : > { %v1944_v23 = vpop.f32.mrf.mxu0  ;;  %v1569_v24 = vpop.f32.mrf.mxu1 }
 0x4bb   : > { %v1950_v26 = vpop.f32.mrf.mxu1  ;;  %v1612_v27 = vpop.f32.mrf.mxu0 }
 0x4bc   : > { %v1667_v29 = vsel %vm382_vm1, %v1612_v27, 0.0 }
 0x4bd   : > { %v1955_v43 = vpop.f32.mrf.mxu0  ;;  %v1668_v30 = vadd.f32 %v1667_v29, %v1666_v33 }
 0x4bf   : > { %v1615_v31 = vpop.f32.mrf.mxu0  ;;  %v1658_v32 = vpop.f32.mrf.mxu1 }
 0x4c0   : > { %v1669_v34 = vsel %vm382_vm1, %v1658_v32, 0.0 }
 0x4c1   : > { %v1670_v36 = vadd.f32 %v1669_v34, %v1668_v30  ;;  %v1956_v37 = vpop.f32.mrf.mxu0  ;;  %v1961_v38 = vpop.f32.mrf.mxu1 }
 0x4c3   : > { %v1678_v39 = vadd.f32 %v1840_v35, %v1670_v36  ;;  %v1661_v40 = vpop.f32.mrf.mxu1 }
 0x4c5   : > { %v1962_v41 = vpop.f32.mrf.mxu1  ;;  %1679 = vst.msk [vmem:[%s351_s22] sm:$0xff] %vm382_vm1, %v1678_v39 }
 0x4c6   : > { %2214 = shalt.err (!%p2211_p13)
}
 0x4c7   : > { %s2215_s15 = scalar_lea.hbm %s2664_s3, 128  ;;  %s2219_s21 = scalar_lea.hbm %s2714_s7, 256 }
 0x4c8   : > { %p2216_p1 = scmp.ne.s32.totalorder %s2664_s3, %s2215_s15  ;;  %p2220_p12 = scmp.lt.s32.totalorder %s2664_s3, %s2714_s7 }
 0x4c9   : > { %p2221_p5 = scmp.lt.s32.totalorder %s2219_s21, %s2215_s15 }
 0x4ca   : > { %p2217_p4 = pnand %p2216_p1, %p2447_p0 }
 0x4cb   : > { %p2222_p3 = por %p2221_p5, %p2220_p12 }
 0x4cc   : > { %p2218_p8 = pneg %p2217_p4 }
 0x4ce   : > { %p2223_p10 = pnand %p2222_p3, %p2218_p8 }
 0x4d0   : > { %2226 = shalt.err (!%p2223_p10)
}
 0x4d1   : > { %1977 = dma.vmem_to_hbm [thread:$0]  (%p2447_p0), %s1696_s19, 128, %s2664_s3, %s1681_s9  }
 0x4d2 PF: > { %s1707_s18 = sand.u32 1, %s2269_s24   ;;  %p2736_p2 = scmp.ne.s32.totalorder %s2725_s12, 0 }
 0x4d3   : > { %p2737_p11 = scmp.ge.s32.totalorder %s2289_s29, 2  ;;  %s1708_s22 = scalar_lea.sflag [#allocation6], %s1707_s18 }
 0x4d5   : > { %p1994_p7 = pnand %p2737_p11, %p2736_p2 }
 0x4d7   : > { %p1995_p6 = pneg %p1994_p7 }
 0x4d9   : > { %2264 = dma.done.wait (%p1995_p6), %s1708_s22, 128  }
 0x4da   : > { %2266 = vsyncadd (%p1995_p6), %s1708_s22, 4294967168  ;;  %s25_s29 = sadd.s32 1, %s2289_s29   ;;  %s2738_s24 = smov %s2273_s25 }
 0x4db   : > { %p22_p9 = scmp.ge.s32.totalorder %s25_s29, 4   ;;  %s2739_s25 = smov %s2277_s26 }
 0x4dc   : > { %s2740_s26 = smov %s2459_s23  ;;  %s2741_s27 = smov %s2285_s28 }
 0x4dd   : > { %s2742_s28 = smov %s2744_s8  ;;  %24 = sbr.rel (!%p22_p9) target bundleno = 12 (0xc), region = 110 }
 0x4e2   :  { %1713 = vsyncpa [#allocation5], 1 }
 0x4e3   :  { %1715 = vsyncpa [#allocation5 + $0x1], 1 }
 0x4e4   :  { %1716 = vsyncpa [#allocation8], 1 }
 0x4e5   :  { %1717 = vsyncpa [#allocation11], 1 }
 0x4e6   :  { %1718 = vsyncpa [#allocation6], 1 }
 0x4e7   :  { %1720 = vsyncpa [#allocation6 + $0x1], 1 }

</bundles_post_ra>
